<compile_context>
chip_gen: v5e
topology: v5e:2x2
jax: 0.10.0
libtpu: 0.0.40
codegen_flags: <defaults>
</compile_context>

<pallas_src>
from functools import partial

import jax
import jax.numpy as jnp
from jax import lax
from jax.experimental import pallas as pl
from jax.experimental.pallas import tpu as pltpu

LANE = 128
_VMEM_LIMIT = 32 * 1024 * 1024      # explicit: > v5e's 16 MiB default, fits v7x's 64 MiB
_PIN_Z_BYTES = 4 * 1024 * 1024      # pin full Z in VMEM if a single copy <= 4 MiB


def _round_up(x, m):
    return (x + m - 1) // m * m


def _pick_tile(n_pad):
    # Largest square tile (multiple of 128) that divides the padded size.
    for t in (512, 256, 128):
        if n_pad % t == 0:
            return t
    return n_pad


def _maybe_pad2(x, rows, cols):
    if x.shape == (rows, cols):
        return x
    return jnp.pad(x, ((0, rows - x.shape[0]), (0, cols - x.shape[1])))


# ---------------------------------------------------------------------------
# Kernel 1: Z = Linear -> ReLU -> Linear (MLPA.gcn_mean), row-strip tiled.
def mlp_kernel(h_ref, w1_ref, b1_ref, w2_ref, b2_ref, z_ref, *,
               tile, n_valid, n_pad):
    z1 = jnp.dot(h_ref[...], w1_ref[...], preferred_element_type=jnp.float32)
    z1 = jnp.maximum(z1 + b1_ref[...], 0.0)
    z = jnp.dot(z1, w2_ref[...], preferred_element_type=jnp.float32) + b2_ref[...]
    if n_pad != n_valid:
        # Padded rows would otherwise be MLP(0) = relu(b1) @ w2 + b2 != 0.
        r = pl.program_id(0) * tile + lax.broadcasted_iota(jnp.int32, z.shape, 0)
        z = jnp.where(r < n_valid, z, 0.0)
    z_ref[...] = z


# ---------------------------------------------------------------------------
# Shared per-tile compute: logits tile and sampled (unnormalized) adj tile.
def _adj_tile(u_ij, u_ji, zi, zj, i, j, *, inv_temp, bias, tile, n_valid, n_pad):
    # Gram tile Z_i @ Z_j^T (contract feature axis, no explicit transpose).
    logits = lax.dot_general(zi, zj, (((1,), (1,)), ((), ())),
                             preferred_element_type=jnp.float32)
    r = i * tile + lax.broadcasted_iota(jnp.int32, (tile, tile), 0)
    c = j * tile + lax.broadcasted_iota(jnp.int32, (tile, tile), 1)

    # Symmetric logistic gate built in-kernel from the raw uniform draw:
    #   gate_sym[r,c] = g(u[r,c]) if r < c else g(u[c,r])  (diag overwritten).
    # This equals the reference's triu(graph,1) + transpose path exactly.
    b = bias + 0.0001
    u_sym = jnp.where(r < c, u_ij, u_ji.T)              # XLU transpose, cheap
    eps = (b - (1.0 - b)) * u_sym + (1.0 - b)
    gate = jnp.log(eps) - jnp.log(1.0 - eps)             # EUP
    graph = jax.nn.sigmoid((gate + logits) * inv_temp)   # binary-concrete

    adj = jnp.where(r == c, 1.0, graph)                  # adj.fill_diagonal_(1)
    if n_pad != n_valid:
        # Zero padded columns AFTER the diagonal fill (keeps degrees clean).
        adj = jnp.where(c < n_valid, adj, 0.0)
    return logits, adj


def _slice_zj(zj_ref, j, tile, pin_z):
    if pin_z:
        return zj_ref[pl.ds(pl.multiple_of(j * tile, tile), tile), :]
    return zj_ref[...]


# ---------------------------------------------------------------------------
# Pass A: row degrees only (adjacency recomputed per tile, never stored).
def degree_kernel(u_ij_ref, u_ji_ref, zi_ref, zj_ref, deg_ref, *,
                  pin_z, tile, **kw):
    i = pl.program_id(0)
    j = pl.program_id(1)
    zj = _slice_zj(zj_ref, j, tile, pin_z)
    _, adj = _adj_tile(u_ij_ref[...], u_ji_ref[...], zi_ref[...], zj, i, j,
                       tile=tile, **kw)

    @pl.when(j == 0)
    def _():
        deg_ref[...] = jnp.zeros_like(deg_ref)

    deg_ref[...] += jnp.sum(adj, axis=1, keepdims=True)


# ---------------------------------------------------------------------------
# Pass B: adj_logits and the already-normalized adjacency, written directly.
def adj_out_kernel(u_ij_ref, u_ji_ref, zi_ref, zj_ref, drow_ref, dcol_ref,
                   logits_ref, adjn_ref, *, pin_z, tile, **kw):
    i = pl.program_id(0)
    j = pl.program_id(1)
    zj = _slice_zj(zj_ref, j, tile, pin_z)
    logits, adj = _adj_tile(u_ij_ref[...], u_ji_ref[...], zi_ref[...], zj, i, j,
                            tile=tile, **kw)
    logits_ref[...] = logits
    adjn_ref[...] = adj * drow_ref[...] * dcol_ref[...]


# ---------------------------------------------------------------------------
def pgnn_mask_forward(h, params, u, temperature=1.0, bias=0.0):
    """Returns (adj_sampled_normalized, adj_logits), both (N, N) float32."""
    w1, b1, w2, b2 = params
    N, H = h.shape
    Dz = w2.shape[1]
    f32 = jnp.float32

    n_pad = _round_up(N, LANE)
    h_pad = _round_up(H, LANE)
    dz_pad = _round_up(Dz, LANE)
    tile = _pick_tile(n_pad)
    n_blk = n_pad // tile

    # Lane-dense (zero-padded) operands.  Only `u` is N^2; a single pad pass.
    h_p = _maybe_pad2(h.astype(f32), n_pad, h_pad)
    w1_p = _maybe_pad2(w1.astype(f32), h_pad, h_pad)
    b1_p = _maybe_pad2(b1.astype(f32).reshape(1, -1), 1, h_pad)
    w2_p = _maybe_pad2(w2.astype(f32), h_pad, dz_pad)
    b2_p = _maybe_pad2(b2.astype(f32).reshape(1, -1), 1, dz_pad)
    u_p = _maybe_pad2(u.astype(f32), n_pad, n_pad)   # raw uniform; gate in-kernel

    # ---- kernel 1: Z = MLP(h) over row strips, padded rows zeroed ----------
    z = pl.pallas_call(
        partial(mlp_kernel, tile=tile, n_valid=N, n_pad=n_pad),
        out_shape=jax.ShapeDtypeStruct((n_pad, dz_pad), f32),
        grid_spec=pltpu.PrefetchScalarGridSpec(
            num_scalar_prefetch=0,
            grid=(n_blk,),
            in_specs=[
                pl.BlockSpec((tile, h_pad), lambda i: (i, 0)),
                pl.BlockSpec((h_pad, h_pad), lambda i: (0, 0)),
                pl.BlockSpec((1, h_pad), lambda i: (0, 0)),
                pl.BlockSpec((h_pad, dz_pad), lambda i: (0, 0)),
                pl.BlockSpec((1, dz_pad), lambda i: (0, 0)),
            ],
            out_specs=pl.BlockSpec((tile, dz_pad), lambda i: (i, 0)),
        ),
        compiler_params=pltpu.CompilerParams(
            dimension_semantics=("parallel",),
            vmem_limit_bytes=_VMEM_LIMIT),
    )(h_p, w1_p, b1_p, w2_p, b2_p)

    # Pin the whole Z matrix in VMEM when small enough; Z_i stays a per-strip
    # tile (its block index is constant across j, so no re-DMA either way).
    pin_z = (n_pad * dz_pad * 4) <= _PIN_Z_BYTES
    if pin_z:
        zj_spec = pl.BlockSpec((n_pad, dz_pad), lambda i, j: (0, 0))
    else:
        zj_spec = pl.BlockSpec((tile, dz_pad), lambda i, j: (j, 0))
    zi_spec = pl.BlockSpec((tile, dz_pad), lambda i, j: (i, 0))
    u_ij_spec = pl.BlockSpec((tile, tile), lambda i, j: (i, j))
    u_ji_spec = pl.BlockSpec((tile, tile), lambda i, j: (j, i))

    common = dict(inv_temp=1.0 / float(temperature), bias=float(bias),
                  tile=tile, n_valid=N, n_pad=n_pad, pin_z=pin_z)

    # ---- pass A: row degrees (j is the reduction axis) ---------------------
    deg = pl.pallas_call(
        partial(degree_kernel, **common),
        out_shape=jax.ShapeDtypeStruct((n_pad, 1), f32),
        grid_spec=pltpu.PrefetchScalarGridSpec(
            num_scalar_prefetch=0,
            grid=(n_blk, n_blk),
            in_specs=[u_ij_spec, u_ji_spec, zi_spec, zj_spec],
            out_specs=pl.BlockSpec((tile, 1), lambda i, j: (i, 0)),
        ),
        compiler_params=pltpu.CompilerParams(
            dimension_semantics=("parallel", "arbitrary"),
            vmem_limit_bytes=_VMEM_LIMIT),
    )(u_p, u_p, z, z)

    # rsqrt only on the (n_pad, 1) degree vector; the symmetric adjacency
    # means column degrees equal row degrees (never expanded to NxN).
    d_row = jnp.where(deg > 0.0, lax.rsqrt(deg), 0.0)       # (n_pad, 1)
    d_col = d_row.reshape(1, n_pad)                          # (1, n_pad)

    # ---- pass B: adj_logits + D^-1/2 A D^-1/2 in one fused write -----------
    logits_p, adj_norm_p = pl.pallas_call(
        partial(adj_out_kernel, **common),
        out_shape=(jax.ShapeDtypeStruct((n_pad, n_pad), f32),
                   jax.ShapeDtypeStruct((n_pad, n_pad), f32)),
        grid_spec=pltpu.PrefetchScalarGridSpec(
            num_scalar_prefetch=0,
            grid=(n_blk, n_blk),
            in_specs=[u_ij_spec, u_ji_spec, zi_spec, zj_spec,
                      pl.BlockSpec((tile, 1), lambda i, j: (i, 0)),
                      pl.BlockSpec((1, tile), lambda i, j: (0, j))],
            out_specs=(pl.BlockSpec((tile, tile), lambda i, j: (i, j)),
                       pl.BlockSpec((tile, tile), lambda i, j: (i, j))),
        ),
        compiler_params=pltpu.CompilerParams(
            dimension_semantics=("parallel", "parallel"),
            vmem_limit_bytes=_VMEM_LIMIT),
    )(u_p, u_p, z, z, d_row, d_col)

    if n_pad != N:
        return adj_norm_p[:N, :N], logits_p[:N, :N]
    return adj_norm_p, logits_p


if __name__ == "__main__":
    key = jax.random.PRNGKey(0)
    N, H, Dz = 8, 32, 16   # N nodes, n_hidden=32, features.shape[1]=16

    k_h, k_w1, k_w2, k_u = jax.random.split(key, 4)

    h = jax.random.normal(k_h, (N, H), jnp.float32)
    w1 = jax.random.normal(k_w1, (H, H), jnp.float32) * (1.0 / jnp.sqrt(H))
    b1 = jnp.zeros((1, H), jnp.float32)
    w2 = jax.random.normal(k_w2, (H, Dz), jnp.float32) * (1.0 / jnp.sqrt(H))
    b2 = jnp.zeros((1, Dz), jnp.float32)

    # Uniform noise standing in for torch.rand in _sample_graph.
    u = jax.random.uniform(k_u, (N, N), jnp.float32)

    adj_sampled, adj_logits = pgnn_mask_forward(h, (w1, b1, w2, b2), u,
                                                temperature=1.0, bias=0.0)
    jax.block_until_ready((adj_sampled, adj_logits))

    # ---- pure-JAX reference of the PyTorch forward (same noise draw) -------
    hp = jax.lax.Precision.HIGHEST
    z_ref = jnp.maximum(jnp.matmul(h, w1, precision=hp) + b1, 0.0)
    z_ref = jnp.matmul(z_ref, w2, precision=hp) + b2
    logits_ref = jnp.matmul(z_ref, z_ref.T, precision=hp)
    bb = 0.0 + 0.0001
    eps_r = (bb - (1.0 - bb)) * u + (1.0 - bb)
    gate_r = jnp.log(eps_r) - jnp.log(1.0 - eps_r)
    graph_r = jax.nn.sigmoid((gate_r + logits_ref) / 1.0)
    upper_r = jnp.triu(graph_r, 1)
    adj_r = upper_r + upper_r.T
    adj_r = adj_r.at[jnp.arange(N), jnp.arange(N)].set(1.0)
    d_r = adj_r.sum(1) ** -0.5
    adj_ref = adj_r * d_r[:, None] * d_r[None, :]

    assert adj_sampled.shape == (N, N) and adj_logits.shape == (N, N)
    assert bool(jnp.all(jnp.isfinite(adj_sampled)))
    assert bool(jnp.all(jnp.isfinite(adj_logits)))
    # Loose tolerances: immune to MXU-vs-XLA matmul precision paths, still
    # catches any structural bug (masks, transposes, normalization).
    assert bool(jnp.allclose(adj_logits, logits_ref, rtol=5e-2, atol=5e-2))
    assert bool(jnp.allclose(adj_sampled, adj_ref, rtol=5e-2, atol=5e-2))
    print("KERNEL_OK")
</pallas_src>

<mosaic_0001>
module attributes {stable_mosaic.version = 11 : i64} {
  func.func @mlp_kernel(%arg0: i32, %arg1: memref<128x128xf32, #tpu.memory_space<vmem>>, %arg2: memref<128x128xf32, #tpu.memory_space<vmem>>, %arg3: memref<1x128xf32, #tpu.memory_space<vmem>>, %arg4: memref<128x128xf32, #tpu.memory_space<vmem>>, %arg5: memref<1x128xf32, #tpu.memory_space<vmem>>, %arg6: memref<128x128xf32, #tpu.memory_space<vmem>>) attributes {dimension_semantics = [#tpu.dimension_semantics<parallel>], iteration_bounds = array<i64: 1>, scalar_prefetch = 0 : i64, scratch_operands = 0 : i64, tpu.core_type = #tpu.core_type<tc>, window_params = [{transform_indices = @transform_0, window_bounds = array<i64: 128, 128>}, {pipeline_mode = #tpu.pipeline_mode<synchronous>, transform_indices = @transform_1, window_bounds = array<i64: 128, 128>}, {pipeline_mode = #tpu.pipeline_mode<synchronous>, transform_indices = @transform_2, window_bounds = array<i64: 1, 128>}, {pipeline_mode = #tpu.pipeline_mode<synchronous>, transform_indices = @transform_3, window_bounds = array<i64: 128, 128>}, {pipeline_mode = #tpu.pipeline_mode<synchronous>, transform_indices = @transform_4, window_bounds = array<i64: 1, 128>}, {transform_indices = @transform_5, window_bounds = array<i64: 128, 128>}]} {
    %c0 = arith.constant 0 : index
    %c0_0 = arith.constant 0 : index
    %0 = vector.load %arg1[%c0, %c0_0] : memref<128x128xf32, #tpu.memory_space<vmem>>, vector<128x128xf32>
    %c0_1 = arith.constant 0 : index
    %c0_2 = arith.constant 0 : index
    %1 = vector.load %arg2[%c0_1, %c0_2] : memref<128x128xf32, #tpu.memory_space<vmem>>, vector<128x128xf32>
    %cst = arith.constant dense<0.000000e+00> : vector<128x128xf32>
    %2 = tpu.matmul %0, %1, %cst {dimension_numbers = #tpu.dot_dimension_numbers<[1], [0], [0], [1], [0, 0, 1, 1], [], []>} : vector<128x128xf32>, vector<128x128xf32>, vector<128x128xf32> -> vector<128x128xf32>
    %c0_3 = arith.constant 0 : index
    %c0_4 = arith.constant 0 : index
    %3 = vector.load %arg3[%c0_3, %c0_4] : memref<1x128xf32, #tpu.memory_space<vmem>>, vector<1x128xf32>
    %4 = vector.broadcast %3 : vector<1x128xf32> to vector<128x128xf32>
    %5 = arith.addf %2, %4 : vector<128x128xf32>
    %cst_5 = arith.constant 0.000000e+00 : f32
    %6 = vector.broadcast %cst_5 : f32 to vector<128x128xf32>
    %7 = arith.maximumf %5, %6 : vector<128x128xf32>
    %c0_6 = arith.constant 0 : index
    %c0_7 = arith.constant 0 : index
    %8 = vector.load %arg4[%c0_6, %c0_7] : memref<128x128xf32, #tpu.memory_space<vmem>>, vector<128x128xf32>
    %cst_8 = arith.constant dense<0.000000e+00> : vector<128x128xf32>
    %9 = tpu.matmul %7, %8, %cst_8 {dimension_numbers = #tpu.dot_dimension_numbers<[1], [0], [0], [1], [0, 0, 1, 1], [], []>} : vector<128x128xf32>, vector<128x128xf32>, vector<128x128xf32> -> vector<128x128xf32>
    %c0_9 = arith.constant 0 : index
    %c0_10 = arith.constant 0 : index
    %10 = vector.load %arg5[%c0_9, %c0_10] : memref<1x128xf32, #tpu.memory_space<vmem>>, vector<1x128xf32>
    %11 = vector.broadcast %10 : vector<1x128xf32> to vector<128x128xf32>
    %12 = arith.addf %9, %11 : vector<128x128xf32>
    %c128_i32 = arith.constant 128 : i32
    %13 = arith.muli %arg0, %c128_i32 : i32
    %14 = tpu.iota {dimensions = array<i32: 0>} : vector<128x128xi32>
    %15 = vector.broadcast %13 : i32 to vector<128x128xi32>
    %16 = arith.addi %15, %14 : vector<128x128xi32>
    %c8_i32 = arith.constant 8 : i32
    %17 = vector.broadcast %c8_i32 : i32 to vector<128x128xi32>
    %18 = arith.cmpi slt, %16, %17 : vector<128x128xi32>
    %cst_11 = arith.constant 0.000000e+00 : f32
    %19 = vector.broadcast %cst_11 : f32 to vector<128x128xf32>
    %20 = arith.select %18, %12, %19 : vector<128x128xi1>, vector<128x128xf32>
    %c0_12 = arith.constant 0 : index
    %c0_13 = arith.constant 0 : index
    %21 = vector.load %arg6[%c0_12, %c0_13] : memref<128x128xf32, #tpu.memory_space<vmem>>, vector<128x128xf32>
    tpu.vector_store %arg6[%c0_12, %c0_13], %20 {strides = array<i32>} : memref<128x128xf32, #tpu.memory_space<vmem>>, vector<128x128xf32>,
    return
  }
  func.func @transform_0(%arg0: i32) -> (i32, i32) {
    %c0_i32 = arith.constant 0 : i32
    %c0_i32_0 = arith.constant 0 : i32
    return %arg0, %c0_i32 : i32, i32
  }
  func.func @transform_1(%arg0: i32) -> (i32, i32) {
    %c0_i32 = arith.constant 0 : i32
    %c0_i32_0 = arith.constant 0 : i32
    %c0_i32_1 = arith.constant 0 : i32
    return %c0_i32, %c0_i32_0 : i32, i32
  }
  func.func @transform_2(%arg0: i32) -> (i32, i32) {
    %c0_i32 = arith.constant 0 : i32
    %c0_i32_0 = arith.constant 0 : i32
    %c0_i32_1 = arith.constant 0 : i32
    return %c0_i32, %c0_i32_0 : i32, i32
  }
  func.func @transform_3(%arg0: i32) -> (i32, i32) {
    %c0_i32 = arith.constant 0 : i32
    %c0_i32_0 = arith.constant 0 : i32
    %c0_i32_1 = arith.constant 0 : i32
    return %c0_i32, %c0_i32_0 : i32, i32
  }
  func.func @transform_4(%arg0: i32) -> (i32, i32) {
    %c0_i32 = arith.constant 0 : i32
    %c0_i32_0 = arith.constant 0 : i32
    %c0_i32_1 = arith.constant 0 : i32
    return %c0_i32, %c0_i32_0 : i32, i32
  }
  func.func @transform_5(%arg0: i32) -> (i32, i32) {
    %c0_i32 = arith.constant 0 : i32
    %c0_i32_0 = arith.constant 0 : i32
    return %arg0, %c0_i32 : i32, i32
  }
}

</mosaic_0001>

<bundles_post_ra>
// kernel: tpu_custom_call.1
= control target key start
LH: loop header
LB: loop body
LE: loop exit
PB: predicated region body
PF: predicated region fallthrough
CT: control target
= control target key end

     0   :  { %10 = vsyncpa [#allocation3], 0  ;;  %s583_s0 = inlined_call_operand.hbm [shape: f32[128,128], index: 0, kind: input, shape index: {}]   ;;  %s584_s1 = inlined_call_operand.hbm [shape: f32[128,128], index: 1, kind: input, shape index: {}]   ;;  %s585_s2 = inlined_call_operand.vmem [shape: f32[1,128], index: 2, kind: input, shape index: {}]   ;;  %s586_s3 = inlined_call_operand.hbm [shape: f32[128,128], index: 3, kind: input, shape index: {}]   ;;  %s587_s4 = inlined_call_operand.vmem [shape: f32[1,128], index: 4, kind: input, shape index: {}]   ;;  %s588_s5 = inlined_call_operand.hbm [shape: f32[128,128], index: 5, kind: output, shape index: {}]  }
   0x1   :  { %11 = vsyncpa [#allocation6], 0 }
   0x2   :  { %12 = vsyncpa [#allocation4], 0  ;;  %s30_s20 = sshll.u32 %s584_s1, 4  ;;  %s516_s21 = smov [#allocation5]   ;;  %s31_s20 = int_to_ptr.hbm [resolvable:$true] %s30_s20 }
   0x3   :  { %s32_s22 = sshll.u32 %s516_s21, 4  ;;  %s17_s25 = sshll.u32 %s583_s0, 4  ;;  %s33_s22 = int_to_ptr.vmem [resolvable:$true] %s32_s22  ;;  %s18_s25 = int_to_ptr.hbm [resolvable:$true] %s17_s25 }
   0x4   :  { %s517_s26 = smov 128   ;;  %s518_s27 = smov 8  }
   0x5   :  { %38 = dma.hbm_to_vmem [thread:$0]  %s31_s20, 2048, %s33_s22, [#allocation6], %s517_s26, %s517_s26, %s518_s27  }
   0x6   :  { %s519_s28 = smov [#allocation2]   ;;  %s45_s1 = sshll.u32 %s586_s3, 4  ;;  %s46_s1 = int_to_ptr.hbm [resolvable:$true] %s45_s1 }
   0x7   :  { %s19_s29 = sshll.u32 %s519_s28, 4  ;;  %s520_s0 = smov [#allocation7]   ;;  %s20_s29 = int_to_ptr.vmem [resolvable:$true] %s19_s29 }
   0x8   :  { %25 = dma.hbm_to_vmem [thread:$0]  %s18_s25, 2048, %s20_s29, [#allocation3], %s517_s26, %s517_s26, %s518_s27  }
   0x9   :  { %s47_s7 = sshll.u32 %s520_s0, 4  ;;  %s48_s7 = int_to_ptr.vmem [resolvable:$true] %s47_s7 }
   0xa   :  { %53 = dma.hbm_to_vmem [thread:$0]  %s46_s1, 2048, %s48_s7, [#allocation6], %s517_s26, %s517_s26, %s518_s27  }
   0xb   :  { %510 = dma.done.wait [#allocation3], 2048  }
   0xc   :  { %511 = vsyncadd [#allocation3], 4294965248 }
   0xd   :  { %512 = dma.done.wait [#allocation6], 4096  }
   0xe   :  { %513 = vsyncadd [#allocation6], 4294963200  ;;  %v99_v0 = vld [vmem:[#allocation5 + $0x78] sm:$0xff]  ;;  %v98_v1 = vld [vmem:[#allocation5 + $0x70] sm:$0xff]  ;;  %s359_s13 = sshll.u32 %s588_s5, 4  ;;  %s360_s13 = int_to_ptr.hbm [resolvable:$true] %s359_s13 }
   0xf   :  { %373 = vmatpush.msra.mxu2 %v99_v0  ;;  %104 = vmatpush.msra.mxu0 %v99_v0  ;;  %v97_v2 = vld [vmem:[#allocation5 + $0x68] sm:$0xff]  ;;  %v96_v3 = vld [vmem:[#allocation5 + $0x60] sm:$0xff]  ;;  %v95_v4 = vld [vmem:[#allocation5 + $0x58] sm:$0xff] }
  0x10   :  { %v94_v5 = vld [vmem:[#allocation5 + $0x50] sm:$0xff]  ;;  %v93_v6 = vld [vmem:[#allocation5 + $0x48] sm:$0xff]  ;;  %v92_v7 = vld [vmem:[#allocation5 + $0x40] sm:$0xff] }
  0x11   :  { %374 = vmatpush.msra.mxu2 %v98_v1  ;;  %105 = vmatpush.msra.mxu0 %v98_v1  ;;  %v91_v8 = vld [vmem:[#allocation5 + $0x38] sm:$0xff]  ;;  %v90_v9 = vld [vmem:[#allocation5 + $0x30] sm:$0xff]  ;;  %v89_v10 = vld [vmem:[#allocation5 + $0x28] sm:$0xff] }
  0x12   :  { %v88_v11 = vld [vmem:[#allocation5 + $0x20] sm:$0xff]  ;;  %v87_v12 = vld [vmem:[#allocation5 + $0x18] sm:$0xff]  ;;  %v86_v13 = vld [vmem:[#allocation5 + $0x10] sm:$0xff] }
  0x13   :  { %375 = vmatpush.msra.mxu2 %v97_v2  ;;  %106 = vmatpush.msra.mxu0 %v97_v2  ;;  %v85_v14 = vld [vmem:[#allocation5 + $0x8] sm:$0xff]  ;;  %v84_v15 = vld [vmem:[#allocation5] sm:$0xff]  ;;  %v78_v20 = vld [vmem:[#allocation2 + $0x50] sm:$0xff] }
  0x14   :  { %v76_v16 = vld [vmem:[#allocation2 + $0x40] sm:$0xff]  ;;  %v77_v18 = vld [vmem:[#allocation2 + $0x48] sm:$0xff]  ;;  %v70_v21 = vld [vmem:[#allocation2 + $0x10] sm:$0xff] }
  0x15   :  { %376 = vmatpush.msra.mxu2 %v96_v3  ;;  %107 = vmatpush.msra.mxu0 %v96_v3  ;;  %v68_v17 = vld [vmem:[#allocation2] sm:$0xff]  ;;  %v69_v19 = vld [vmem:[#allocation2 + $0x8] sm:$0xff]  ;;  %v79_v22 = vld [vmem:[#allocation2 + $0x58] sm:$0xff] }
  0x16   :  { %v71_v23 = vld [vmem:[#allocation2 + $0x18] sm:$0xff]  ;;  %v199_v25 = vld [vmem:[#allocation7 + $0x70] sm:$0xff]  ;;  %v198_v26 = vld [vmem:[#allocation7 + $0x68] sm:$0xff] }
  0x17   :  { %377 = vmatpush.msra.mxu2 %v95_v4  ;;  %108 = vmatpush.msra.mxu0 %v95_v4  ;;  %v200_v24 = vld [vmem:[#allocation7 + $0x78] sm:$0xff]  ;;  %v197_v27 = vld [vmem:[#allocation7 + $0x60] sm:$0xff]  ;;  %v195_v31 = vld [vmem:[#allocation7 + $0x50] sm:$0xff] }
  0x18   :  { %389 = vmatpush.msra.mxu3 %v200_v24  ;;  %205 = vmatpush.msra.mxu1 %v200_v24  ;;  %v80_v28 = vld [vmem:[#allocation2 + $0x60] sm:$0xff]  ;;  %v196_v30 = vld [vmem:[#allocation7 + $0x58] sm:$0xff]  ;;  %v194_v32 = vld [vmem:[#allocation7 + $0x48] sm:$0xff] }
  0x19   :  { %378 = vmatpush.msra.mxu2 %v94_v5  ;;  %109 = vmatpush.msra.mxu0 %v94_v5  ;;  %v72_v29 = vld [vmem:[#allocation2 + $0x20] sm:$0xff]  ;;  %v81_v34 = vld [vmem:[#allocation2 + $0x68] sm:$0xff]  ;;  %v192_v36 = vld [vmem:[#allocation7 + $0x38] sm:$0xff] }
  0x1a   :  { %390 = vmatpush.msra.mxu3 %v199_v25  ;;  %206 = vmatpush.msra.mxu1 %v199_v25  ;;  %v193_v33 = vld [vmem:[#allocation7 + $0x40] sm:$0xff]  ;;  %v73_v35 = vld [vmem:[#allocation2 + $0x28] sm:$0xff]  ;;  %v191_v37 = vld [vmem:[#allocation7 + $0x30] sm:$0xff] }
  0x1b   :  { %379 = vmatpush.msra.mxu2 %v93_v6  ;;  %110 = vmatpush.msra.mxu0 %v93_v6  ;;  %v190_v38 = vld [vmem:[#allocation7 + $0x28] sm:$0xff]  ;;  %v189_v39 = vld [vmem:[#allocation7 + $0x20] sm:$0xff]  ;;  %v82_v40 = vld [vmem:[#allocation2 + $0x70] sm:$0xff] }
  0x1c   :  { %391 = vmatpush.msra.mxu3 %v198_v26  ;;  %207 = vmatpush.msra.mxu1 %v198_v26  ;;  %v74_v41 = vld [vmem:[#allocation2 + $0x30] sm:$0xff]  ;;  %v188_v42 = vld [vmem:[#allocation7 + $0x18] sm:$0xff]  ;;  %v186_v46 = vld [vmem:[#allocation7 + $0x8] sm:$0xff] }
  0x1d   :  { %380 = vmatpush.msra.mxu2 %v92_v7  ;;  %111 = vmatpush.msra.mxu0 %v92_v7  ;;  %v83_v43 = vld [vmem:[#allocation2 + $0x78] sm:$0xff]  ;;  %v187_v45 = vld [vmem:[#allocation7 + $0x10] sm:$0xff]  ;;  %v185_v47 = vld [vmem:[#allocation7] sm:$0xff] }
  0x1e   :  { %392 = vmatpush.msra.mxu3 %v197_v27  ;;  %208 = vmatpush.msra.mxu1 %v197_v27  ;;  %v75_v44 = vld [vmem:[#allocation2 + $0x38] sm:$0xff]  ;;  %v412_v48 = vld [vmem:[%s585_s2] ss:$0 sm:$0xff] }
  0x1f   :  { %381 = vmatpush.msra.mxu2 %v91_v8  ;;  %112 = vmatpush.msra.mxu0 %v91_v8 }
  0x20   :  { %393 = vmatpush.msra.mxu3 %v196_v30  ;;  %209 = vmatpush.msra.mxu1 %v196_v30 }
  0x21   :  { %382 = vmatpush.msra.mxu2 %v90_v9  ;;  %113 = vmatpush.msra.mxu0 %v90_v9 }
  0x22   :  { %394 = vmatpush.msra.mxu3 %v195_v31  ;;  %210 = vmatpush.msra.mxu1 %v195_v31 }
  0x23   :  { %383 = vmatpush.msra.mxu2 %v89_v10  ;;  %114 = vmatpush.msra.mxu0 %v89_v10 }
  0x24   :  { %395 = vmatpush.msra.mxu3 %v194_v32  ;;  %211 = vmatpush.msra.mxu1 %v194_v32 }
  0x25   :  { %384 = vmatpush.msra.mxu2 %v88_v11  ;;  %115 = vmatpush.msra.mxu0 %v88_v11 }
  0x26   :  { %396 = vmatpush.msra.mxu3 %v193_v33  ;;  %212 = vmatpush.msra.mxu1 %v193_v33  ;;  %v413_v33 = vld [vmem:[%s587_s4] ss:$0 sm:$0xff]  ;;  %s522_s4 = smov [#allocation8]  }
  0x27   :  { %385 = vmatpush.msra.mxu2 %v87_v12  ;;  %116 = vmatpush.msra.mxu0 %v87_v12  ;;  %s357_s10 = sshll.u32 %s522_s4, 4  ;;  %s358_s10 = int_to_ptr.vmem [resolvable:$true] %s357_s10 }
  0x28   :  { %397 = vmatpush.msra.mxu3 %v192_v36  ;;  %213 = vmatpush.msra.mxu1 %v192_v36 }
  0x29   :  { %386 = vmatpush.msra.mxu2 %v86_v13  ;;  %117 = vmatpush.msra.mxu0 %v86_v13 }
  0x2a   :  { %398 = vmatpush.msra.mxu3 %v191_v37  ;;  %214 = vmatpush.msra.mxu1 %v191_v37 }
  0x2b   :  { %387 = vmatpush.msra.mxu2 %v85_v14  ;;  %118 = vmatpush.msra.mxu0 %v85_v14 }
  0x2c   :  { %399 = vmatpush.msra.mxu3 %v190_v38  ;;  %215 = vmatpush.msra.mxu1 %v190_v38 }
  0x2d   :  { %388 = vmatpush.msra.mxu2 %v84_v15  ;;  %119 = vmatpush.msra.mxu0 %v84_v15 }
  0x2e   :  { %144 = vmatmul.f32.vlgmr.msra.gmra.mxu2 %v76_v16  ;;  %120 = vmatmul.f32.vlgmr.msra.gmra.mxu0 %v68_v17 }
  0x2f   :  { %400 = vmatpush.msra.mxu3 %v189_v39  ;;  %216 = vmatpush.msra.mxu1 %v189_v39 }
  0x31   :  { %401 = vmatpush.msra.mxu3 %v188_v42  ;;  %217 = vmatpush.msra.mxu1 %v188_v42 }
  0x33   :  { %402 = vmatpush.msra.mxu3 %v187_v45  ;;  %218 = vmatpush.msra.mxu1 %v187_v45 }
  0x35   :  { %403 = vmatpush.msra.mxu3 %v186_v46  ;;  %219 = vmatpush.msra.mxu1 %v186_v46 }
  0x36   :  { %147 = vmatmul.f32.gmra.mxu2 %v77_v18  ;;  %123 = vmatmul.f32.gmra.mxu0 %v69_v19 }
  0x37   :  { %404 = vmatpush.msra.mxu3 %v185_v47  ;;  %220 = vmatpush.msra.mxu1 %v185_v47 }
  0x3e   :  { %150 = vmatmul.f32.gmra.mxu2 %v78_v20  ;;  %126 = vmatmul.f32.gmra.mxu0 %v70_v21 }
  0x46   :  { %153 = vmatmul.f32.gmra.mxu2 %v79_v22  ;;  %129 = vmatmul.f32.gmra.mxu0 %v71_v23 }
  0x4e   :  { %156 = vmatmul.f32.gmra.mxu2 %v80_v28  ;;  %132 = vmatmul.f32.gmra.mxu0 %v72_v29 }
  0x56   :  { %159 = vmatmul.f32.gmra.mxu2 %v81_v34  ;;  %135 = vmatmul.f32.gmra.mxu0 %v73_v35 }
  0x5e   :  { %162 = vmatmul.f32.gmra.mxu2 %v82_v40  ;;  %138 = vmatmul.f32.gmra.mxu0 %v74_v41 }
  0x66   :  { %165 = vmatmul.f32.gmra.mxu2 %v83_v43  ;;  %141 = vmatmul.f32.gmra.mxu0 %v75_v44  ;;  %v521_v43 = vmov 0.0  }
  0x67   :  { %338 = vst [vmem:[#allocation8 + $0x8] sm:$0xff] %v521_v43 }
  0x68   :  { %339 = vst [vmem:[#allocation8 + $0x10] sm:$0xff] %v521_v43 }
  0x69   :  { %340 = vst [vmem:[#allocation8 + $0x18] sm:$0xff] %v521_v43 }
  0x6a   :  { %341 = vst [vmem:[#allocation8 + $0x20] sm:$0xff] %v521_v43 }
  0x6b   :  { %342 = vst [vmem:[#allocation8 + $0x28] sm:$0xff] %v521_v43 }
  0x6c   :  { %343 = vst [vmem:[#allocation8 + $0x30] sm:$0xff] %v521_v43 }
  0x6d   :  { %344 = vst [vmem:[#allocation8 + $0x38] sm:$0xff] %v521_v43 }
  0x6e   :  { %345 = vst [vmem:[#allocation8 + $0x40] sm:$0xff] %v521_v43 }
  0x6f   :  { %346 = vst [vmem:[#allocation8 + $0x48] sm:$0xff] %v521_v43 }
  0x70   :  { %347 = vst [vmem:[#allocation8 + $0x50] sm:$0xff] %v521_v43 }
  0x71   :  { %348 = vst [vmem:[#allocation8 + $0x58] sm:$0xff] %v521_v43 }
  0x72   :  { %349 = vst [vmem:[#allocation8 + $0x60] sm:$0xff] %v521_v43 }
  0x73   :  { %350 = vst [vmem:[#allocation8 + $0x68] sm:$0xff] %v521_v43 }
  0x74   :  { %351 = vst [vmem:[#allocation8 + $0x70] sm:$0xff] %v521_v43 }
  0x75   :  { %352 = vst [vmem:[#allocation8 + $0x78] sm:$0xff] %v521_v43 }
  0xab   :  { %v121_v49 = vpop.f32.mrf.mxu0 }
  0xac   :  { %v122_v50 = vadd.f32 %v412_v48, %v121_v49 }
  0xae   :  { %v169_v51 = vmax.f32 %v122_v50, 0.0 }
  0xb0   :  { %221 = vmatmul.f32.vlgmr.msra.gmra.mxu1 %v169_v51 }
  0xb1   :  { %v145_v52 = vpop.f32.mrf.mxu2 }
  0xb2   :  { %v146_v53 = vadd.f32 %v412_v48, %v145_v52 }
  0xb3   :  { %v124_v54 = vpop.f32.mrf.mxu0 }
  0xb4   :  { %v177_v55 = vmax.f32 %v146_v53, 0.0  ;;  %v125_v56 = vadd.f32 %v412_v48, %v124_v54 }
  0xb6   :  { %245 = vmatmul.f32.vlgmr.msra.gmra.mxu3 %v177_v55  ;;  %v170_v57 = vmax.f32 %v125_v56, 0.0 }
  0xb8   :  { %224 = vmatmul.f32.gmra.mxu1 %v170_v57 }
  0xb9   :  { %v148_v58 = vpop.f32.mrf.mxu2 }
  0xba   :  { %v149_v59 = vadd.f32 %v412_v48, %v148_v58 }
  0xbb   :  { %v127_v60 = vpop.f32.mrf.mxu0 }
  0xbc   :  { %v178_v61 = vmax.f32 %v149_v59, 0.0  ;;  %v128_v62 = vadd.f32 %v412_v48, %v127_v60 }
  0xbe   :  { %248 = vmatmul.f32.gmra.mxu3 %v178_v61  ;;  %v171_v63 = vmax.f32 %v128_v62, 0.0 }
  0xc0   :  { %227 = vmatmul.f32.gmra.mxu1 %v171_v63 }
  0xc1   :  { %v151_v0 = vpop.f32.mrf.mxu2 }
  0xc2   :  { %v152_v1 = vadd.f32 %v412_v48, %v151_v0 }
  0xc3   :  { %v130_v2 = vpop.f32.mrf.mxu0 }
  0xc4   :  { %v179_v3 = vmax.f32 %v152_v1, 0.0  ;;  %v131_v4 = vadd.f32 %v412_v48, %v130_v2 }
  0xc6   :  { %251 = vmatmul.f32.gmra.mxu3 %v179_v3  ;;  %v172_v5 = vmax.f32 %v131_v4, 0.0 }
  0xc8   :  { %230 = vmatmul.f32.gmra.mxu1 %v172_v5 }
  0xc9   :  { %v154_v6 = vpop.f32.mrf.mxu2 }
  0xca   :  { %v155_v7 = vadd.f32 %v412_v48, %v154_v6 }
  0xcb   :  { %v133_v8 = vpop.f32.mrf.mxu0 }
  0xcc   :  { %v180_v9 = vmax.f32 %v155_v7, 0.0  ;;  %v134_v10 = vadd.f32 %v412_v48, %v133_v8 }
  0xce   :  { %254 = vmatmul.f32.gmra.mxu3 %v180_v9  ;;  %v173_v11 = vmax.f32 %v134_v10, 0.0 }
  0xd0   :  { %233 = vmatmul.f32.gmra.mxu1 %v173_v11 }
  0xd1   :  { %v157_v12 = vpop.f32.mrf.mxu2 }
  0xd2   :  { %v158_v13 = vadd.f32 %v412_v48, %v157_v12 }
  0xd3   :  { %v136_v14 = vpop.f32.mrf.mxu0 }
  0xd4   :  { %v181_v15 = vmax.f32 %v158_v13, 0.0  ;;  %v137_v16 = vadd.f32 %v412_v48, %v136_v14 }
  0xd6   :  { %257 = vmatmul.f32.gmra.mxu3 %v181_v15  ;;  %v174_v17 = vmax.f32 %v137_v16, 0.0 }
  0xd8   :  { %236 = vmatmul.f32.gmra.mxu1 %v174_v17 }
  0xd9   :  { %v160_v18 = vpop.f32.mrf.mxu2 }
  0xda   :  { %v161_v19 = vadd.f32 %v412_v48, %v160_v18 }
  0xdb   :  { %v139_v20 = vpop.f32.mrf.mxu0 }
  0xdc   :  { %v182_v21 = vmax.f32 %v161_v19, 0.0  ;;  %v140_v22 = vadd.f32 %v412_v48, %v139_v20 }
  0xde   :  { %260 = vmatmul.f32.gmra.mxu3 %v182_v21  ;;  %v175_v23 = vmax.f32 %v140_v22, 0.0 }
  0xe0   :  { %239 = vmatmul.f32.gmra.mxu1 %v175_v23 }
  0xe1   :  { %v163_v24 = vpop.f32.mrf.mxu2 }
  0xe2   :  { %v164_v25 = vadd.f32 %v412_v48, %v163_v24 }
  0xe3   :  { %v142_v26 = vpop.f32.mrf.mxu0 }
  0xe4   :  { %v183_v27 = vmax.f32 %v164_v25, 0.0  ;;  %v143_v28 = vadd.f32 %v412_v48, %v142_v26 }
  0xe6   :  { %263 = vmatmul.f32.gmra.mxu3 %v183_v27  ;;  %v176_v29 = vmax.f32 %v143_v28, 0.0 }
  0xe8   :  { %242 = vmatmul.f32.gmra.mxu1 %v176_v29 }
  0xe9   :  { %v166_v30 = vpop.f32.mrf.mxu2 }
  0xea   :  { %v167_v31 = vadd.f32 %v412_v48, %v166_v30 }
  0xec   :  { %v184_v32 = vmax.f32 %v167_v31, 0.0 }
  0xee   :  { %266 = vmatmul.f32.gmra.mxu3 %v184_v32 }
 0x12d   :  { %v222_v34 = vpop.f32.mrf.mxu1 }
 0x12e   :  { %v223_v35 = vadd.f32 %v413_v33, %v222_v34 }
 0x130   :  { %337 = vst [vmem:[#allocation8] sm:$0xff] %v223_v35 }
 0x131   :  { %365 = dma.vmem_to_hbm [thread:$0]  %s358_s10, 2048, %s360_s13, [#allocation4], %s517_s26, %s517_s26, %s518_s27  }
 0x135   :  { %v225_v36 = vpop.f32.mrf.mxu1 }
 0x139   :  { %v246_v37 = vpop.f32.mrf.mxu3 }
 0x13d   :  { %v228_v38 = vpop.f32.mrf.mxu1 }
 0x141   :  { %v249_v39 = vpop.f32.mrf.mxu3 }
 0x145   :  { %v231_v40 = vpop.f32.mrf.mxu1 }
 0x149   :  { %v252_v41 = vpop.f32.mrf.mxu3 }
 0x14d   :  { %v234_v42 = vpop.f32.mrf.mxu1 }
 0x151   :  { %v255_v44 = vpop.f32.mrf.mxu3 }
 0x155   :  { %v237_v45 = vpop.f32.mrf.mxu1 }
 0x159   :  { %v258_v46 = vpop.f32.mrf.mxu3 }
 0x15d   :  { %v240_v47 = vpop.f32.mrf.mxu1 }
 0x161   :  { %v261_v48 = vpop.f32.mrf.mxu3 }
 0x165   :  { %v243_v49 = vpop.f32.mrf.mxu1 }
 0x169   :  { %v264_v50 = vpop.f32.mrf.mxu3 }
 0x171   :  { %v267_v51 = vpop.f32.mrf.mxu3 }
 0x172   :  { %514 = dma.done.wait [#allocation4], 2048  }
 0x173   :  { %515 = vsyncadd [#allocation4], 4294965248 }
 0x174   :  { %370 = vsyncpa [#allocation3], 1 }
 0x175   :  { %371 = vsyncpa [#allocation6], 1 }
 0x176   :  { %372 = vsyncpa [#allocation4], 1 }

</bundles_post_ra>
